<compile_context>
chip_gen: v6e
topology: v6e:2x2x1
jax: 0.10.0
libtpu: 0.0.40
codegen_flags: <defaults>
</compile_context>

<pallas_src>
import jax
import jax.numpy as jnp
import numpy as np
from jax.experimental import pallas as pl
from jax.experimental.pallas import tpu as pltpu


def _make_conv_kernel(KH, KW, OH, OW, WP, L, stride, dilation):
    st, dl = stride, dilation

    def kernel(x_ref, w_ref, b_ref, o_ref):
        # x_ref: (IC, HP*WP)      flattened padded image, one batch element (input dtype)
        # w_ref: (KH*KW, OC, IC)  per-tap weight matrices (grid-invariant, input dtype)
        # b_ref: (OC, 1)          f32 bias column          (grid-invariant)
        # o_ref: (OC, OH*OW)      lane-dense output slab, one batch element (x.dtype)
        acc = None
        for ky in range(KH):
            for kx in range(KW):
                off = ky * dl * WP + kx * dl
                # Shifted (IC, L) window of the flat padded image, loaded
                # straight from the VMEM block (no HBM patch matrix).
                win = x_ref[:, pl.ds(off, L)]
                part = jnp.dot(w_ref[ky * KW + kx], win,
                               preferred_element_type=jnp.float32)
                acc = part if acc is None else acc + part
        res = (acc + b_ref[...]).astype(o_ref.dtype)      # bias added in f32
        # Scatter the valid output pixels row by row into the lane-dense
        # output block (static lane windows; VMEM-local, hidden by the DMA).
        for oh in range(OH):
            base = oh * st * WP
            o_ref[:, oh * OW:(oh + 1) * OW] = res[:, base:base + (OW - 1) * st + 1:st]

    return kernel


def dense_conv2d_forward(x, weight, bias, stride=1, padding=0, dilation=1):
    """Pallas TPU implementation of DenseConv2d.forward (== Denseforward), groups=1."""
    B, IC, H, W = x.shape
    OC, IC_w, KH, KW = weight.shape
    assert IC_w == IC, "groups=1 only"
    st, pd, dl = stride, padding, dilation
    OH = (H + 2 * pd - dl * (KH - 1) - 1) // st + 1
    OW = (W + 2 * pd - dl * (KW - 1) - 1) // st + 1
    HP, WP = H + 2 * pd, W + 2 * pd
    HPWP = HP * WP
    OHOW = OH * OW
    # Last flat padded-input index touched by a valid output pixel, +1.
    L = (OH - 1) * st * WP + (OW - 1) * st + 1

    # --- wrapper glue: all x/weight-sized, stays in the input dtype ---------
    xp = jnp.pad(x, ((0, 0), (0, 0), (pd, pd), (pd, pd))) if pd > 0 else x
    x_flat = xp.reshape(B, IC, HPWP)
    w_taps = jnp.transpose(weight, (2, 3, 0, 1)).reshape(KH * KW, OC, IC)
    w_taps = w_taps.astype(x.dtype)                  # stream weight in MXU-native dtype
    b_col = bias.reshape(OC, 1).astype(jnp.float32)  # bias added on the f32 accumulator

    kernel = _make_conv_kernel(KH, KW, OH, OW, WP, L, st, dl)

    isz = jnp.dtype(x.dtype).itemsize
    flops = 2 * B * (KH * KW) * OC * IC * L
    bytes_accessed = (B * IC * HPWP * isz + KH * KW * OC * IC * isz
                      + OC * 4 + B * OC * OHOW * isz)
    # Per grid step (double-buffered input/weight/bias/output + f32 accumulator).
    vmem_est = (2 * IC * HPWP * isz + 2 * KH * KW * OC * IC * isz + 2 * OC * 4
                + 2 * OC * OHOW * isz + OC * L * 4)
    vmem_limit = int(min(100 * 2 ** 20, max(4 * 2 ** 20, 4 * vmem_est)))

    out_flat = pl.pallas_call(
        kernel,
        out_shape=jax.ShapeDtypeStruct((B, OC, OHOW), x.dtype),
        grid=(B,),
        in_specs=[
            pl.BlockSpec((None, IC, HPWP), lambda b: (b, 0, 0)),    # streamed image
            pl.BlockSpec((KH * KW, OC, IC), lambda b: (0, 0, 0)),   # grid-invariant taps
            pl.BlockSpec((OC, 1), lambda b: (0, 0)),                # grid-invariant bias
        ],
        out_specs=pl.BlockSpec((None, OC, OHOW), lambda b: (b, 0, 0)),  # lane-dense out
        compiler_params=pltpu.CompilerParams(
            dimension_semantics=("parallel",),
            vmem_limit_bytes=vmem_limit),
        cost_estimate=pl.CostEstimate(flops=flops, transcendentals=0,
                                      bytes_accessed=bytes_accessed),
    )(x_flat, w_taps, b_col)

    # Only a trivial last-dim split remains (no transpose, no extra pad copy).
    out = out_flat.reshape(B, OC, OH, OW)
    # TODO(synk): the module also caches self.dense_w / self.dense_bias (the
    # explicit dense matrix) as attributes; those side artifacts are not part
    # of the forward output and are intentionally not materialized here.
    return out


if __name__ == "__main__":
    # small shapes consistent with the module's forward
    B, IC, H, W = 2, 4, 16, 16
    OC, KH, KW = 8, 3, 3
    stride, padding, dilation = 1, 1, 1

    key = jax.random.PRNGKey(0)
    k_w, k_b, k_x = jax.random.split(key, 3)
    weight = jax.random.normal(k_w, (OC, IC, KH, KW), dtype=jnp.float32)  # torch.randn
    bias = 0.1 * jax.random.normal(k_b, (OC,), dtype=jnp.float32)         # learnable bias
    x = jax.random.normal(k_x, (B, IC, H, W), dtype=jnp.float32)

    out = dense_conv2d_forward(x, weight, bias, stride=stride,
                               padding=padding, dilation=dilation)
    out = jax.block_until_ready(out)

    # reference: the dense-matrix forward is mathematically conv2d(x, w) + bias
    ref = jax.lax.conv_general_dilated(
        x, weight, window_strides=(stride, stride),
        padding=((padding, padding), (padding, padding)),
        rhs_dilation=(dilation, dilation),
        dimension_numbers=("NCHW", "OIHW", "NCHW")) + bias.reshape(1, OC, 1, 1)
    np.testing.assert_allclose(np.asarray(out), np.asarray(ref),
                               rtol=1e-4, atol=1e-4)

    print("KERNEL_OK")
</pallas_src>

<mosaic_0001>
module attributes {stable_mosaic.version = 11 : i64} {
  func.func @kernel(%arg0: i32, %arg1: memref<1x4x324xf32, #tpu.memory_space<vmem>>, %arg2: memref<9x8x4xf32, #tpu.memory_space<vmem>>, %arg3: memref<8x1xf32, #tpu.memory_space<vmem>>, %arg4: memref<1x8x256xf32, #tpu.memory_space<vmem>>) attributes {dimension_semantics = [#tpu.dimension_semantics<parallel>], iteration_bounds = array<i64: 2>, scalar_prefetch = 0 : i64, scratch_operands = 0 : i64, tpu.core_type = #tpu.core_type<tc>, window_params = [{transform_indices = @transform_0, window_bounds = array<i64: 1, 4, 324>}, {pipeline_mode = #tpu.pipeline_mode<synchronous>, transform_indices = @transform_1, window_bounds = array<i64: 9, 8, 4>}, {pipeline_mode = #tpu.pipeline_mode<synchronous>, transform_indices = @transform_2, window_bounds = array<i64: 8, 1>}, {transform_indices = @transform_3, window_bounds = array<i64: 1, 8, 256>}]} {
    %c0 = arith.constant 0 : index
    %c0_0 = arith.constant 0 : index
    %c0_1 = arith.constant 0 : index
    %0 = vector.load %arg1[%c0, %c0_0, %c0_1] : memref<1x4x324xf32, #tpu.memory_space<vmem>>, vector<1x4x286xf32>
    %1 = vector.shape_cast %0 : vector<1x4x286xf32> to vector<4x286xf32>
    %c0_2 = arith.constant 0 : index
    %c0_3 = arith.constant 0 : index
    %c0_4 = arith.constant 0 : index
    %2 = vector.load %arg2[%c0_2, %c0_3, %c0_4] : memref<9x8x4xf32, #tpu.memory_space<vmem>>, vector<1x8x4xf32>
    %3 = vector.shape_cast %2 : vector<1x8x4xf32> to vector<8x4xf32>
    %cst = arith.constant dense<0.000000e+00> : vector<8x286xf32>
    %4 = tpu.matmul %3, %1, %cst {dimension_numbers = #tpu.dot_dimension_numbers<[1], [0], [0], [1], [0, 0, 1, 1], [], []>} : vector<8x4xf32>, vector<4x286xf32>, vector<8x286xf32> -> vector<8x286xf32>
    %c0_5 = arith.constant 0 : index
    %c0_6 = arith.constant 0 : index
    %c1 = arith.constant 1 : index
    %5 = vector.load %arg1[%c0_5, %c0_6, %c1] : memref<1x4x324xf32, #tpu.memory_space<vmem>>, vector<1x4x286xf32>
    %6 = vector.shape_cast %5 : vector<1x4x286xf32> to vector<4x286xf32>
    %c1_7 = arith.constant 1 : index
    %c0_8 = arith.constant 0 : index
    %c0_9 = arith.constant 0 : index
    %7 = vector.load %arg2[%c1_7, %c0_8, %c0_9] : memref<9x8x4xf32, #tpu.memory_space<vmem>>, vector<1x8x4xf32>
    %8 = vector.shape_cast %7 : vector<1x8x4xf32> to vector<8x4xf32>
    %cst_10 = arith.constant dense<0.000000e+00> : vector<8x286xf32>
    %9 = tpu.matmul %8, %6, %cst_10 {dimension_numbers = #tpu.dot_dimension_numbers<[1], [0], [0], [1], [0, 0, 1, 1], [], []>} : vector<8x4xf32>, vector<4x286xf32>, vector<8x286xf32> -> vector<8x286xf32>
    %10 = arith.addf %4, %9 : vector<8x286xf32>
    %c0_11 = arith.constant 0 : index
    %c0_12 = arith.constant 0 : index
    %c2 = arith.constant 2 : index
    %11 = vector.load %arg1[%c0_11, %c0_12, %c2] : memref<1x4x324xf32, #tpu.memory_space<vmem>>, vector<1x4x286xf32>
    %12 = vector.shape_cast %11 : vector<1x4x286xf32> to vector<4x286xf32>
    %c2_13 = arith.constant 2 : index
    %c0_14 = arith.constant 0 : index
    %c0_15 = arith.constant 0 : index
    %13 = vector.load %arg2[%c2_13, %c0_14, %c0_15] : memref<9x8x4xf32, #tpu.memory_space<vmem>>, vector<1x8x4xf32>
    %14 = vector.shape_cast %13 : vector<1x8x4xf32> to vector<8x4xf32>
    %cst_16 = arith.constant dense<0.000000e+00> : vector<8x286xf32>
    %15 = tpu.matmul %14, %12, %cst_16 {dimension_numbers = #tpu.dot_dimension_numbers<[1], [0], [0], [1], [0, 0, 1, 1], [], []>} : vector<8x4xf32>, vector<4x286xf32>, vector<8x286xf32> -> vector<8x286xf32>
    %16 = arith.addf %10, %15 : vector<8x286xf32>
    %c0_17 = arith.constant 0 : index
    %c0_18 = arith.constant 0 : index
    %c18 = arith.constant 18 : index
    %17 = vector.load %arg1[%c0_17, %c0_18, %c18] : memref<1x4x324xf32, #tpu.memory_space<vmem>>, vector<1x4x286xf32>
    %18 = vector.shape_cast %17 : vector<1x4x286xf32> to vector<4x286xf32>
    %c3 = arith.constant 3 : index
    %c0_19 = arith.constant 0 : index
    %c0_20 = arith.constant 0 : index
    %19 = vector.load %arg2[%c3, %c0_19, %c0_20] : memref<9x8x4xf32, #tpu.memory_space<vmem>>, vector<1x8x4xf32>
    %20 = vector.shape_cast %19 : vector<1x8x4xf32> to vector<8x4xf32>
    %cst_21 = arith.constant dense<0.000000e+00> : vector<8x286xf32>
    %21 = tpu.matmul %20, %18, %cst_21 {dimension_numbers = #tpu.dot_dimension_numbers<[1], [0], [0], [1], [0, 0, 1, 1], [], []>} : vector<8x4xf32>, vector<4x286xf32>, vector<8x286xf32> -> vector<8x286xf32>
    %22 = arith.addf %16, %21 : vector<8x286xf32>
    %c0_22 = arith.constant 0 : index
    %c0_23 = arith.constant 0 : index
    %c19 = arith.constant 19 : index
    %23 = vector.load %arg1[%c0_22, %c0_23, %c19] : memref<1x4x324xf32, #tpu.memory_space<vmem>>, vector<1x4x286xf32>
    %24 = vector.shape_cast %23 : vector<1x4x286xf32> to vector<4x286xf32>
    %c4 = arith.constant 4 : index
    %c0_24 = arith.constant 0 : index
    %c0_25 = arith.constant 0 : index
    %25 = vector.load %arg2[%c4, %c0_24, %c0_25] : memref<9x8x4xf32, #tpu.memory_space<vmem>>, vector<1x8x4xf32>
    %26 = vector.shape_cast %25 : vector<1x8x4xf32> to vector<8x4xf32>
    %cst_26 = arith.constant dense<0.000000e+00> : vector<8x286xf32>
    %27 = tpu.matmul %26, %24, %cst_26 {dimension_numbers = #tpu.dot_dimension_numbers<[1], [0], [0], [1], [0, 0, 1, 1], [], []>} : vector<8x4xf32>, vector<4x286xf32>, vector<8x286xf32> -> vector<8x286xf32>
    %28 = arith.addf %22, %27 : vector<8x286xf32>
    %c0_27 = arith.constant 0 : index
    %c0_28 = arith.constant 0 : index
    %c20 = arith.constant 20 : index
    %29 = vector.load %arg1[%c0_27, %c0_28, %c20] : memref<1x4x324xf32, #tpu.memory_space<vmem>>, vector<1x4x286xf32>
    %30 = vector.shape_cast %29 : vector<1x4x286xf32> to vector<4x286xf32>
    %c5 = arith.constant 5 : index
    %c0_29 = arith.constant 0 : index
    %c0_30 = arith.constant 0 : index
    %31 = vector.load %arg2[%c5, %c0_29, %c0_30] : memref<9x8x4xf32, #tpu.memory_space<vmem>>, vector<1x8x4xf32>
    %32 = vector.shape_cast %31 : vector<1x8x4xf32> to vector<8x4xf32>
    %cst_31 = arith.constant dense<0.000000e+00> : vector<8x286xf32>
    %33 = tpu.matmul %32, %30, %cst_31 {dimension_numbers = #tpu.dot_dimension_numbers<[1], [0], [0], [1], [0, 0, 1, 1], [], []>} : vector<8x4xf32>, vector<4x286xf32>, vector<8x286xf32> -> vector<8x286xf32>
    %34 = arith.addf %28, %33 : vector<8x286xf32>
    %c0_32 = arith.constant 0 : index
    %c0_33 = arith.constant 0 : index
    %c36 = arith.constant 36 : index
    %35 = vector.load %arg1[%c0_32, %c0_33, %c36] : memref<1x4x324xf32, #tpu.memory_space<vmem>>, vector<1x4x286xf32>
    %36 = vector.shape_cast %35 : vector<1x4x286xf32> to vector<4x286xf32>
    %c6 = arith.constant 6 : index
    %c0_34 = arith.constant 0 : index
    %c0_35 = arith.constant 0 : index
    %37 = vector.load %arg2[%c6, %c0_34, %c0_35] : memref<9x8x4xf32, #tpu.memory_space<vmem>>, vector<1x8x4xf32>
    %38 = vector.shape_cast %37 : vector<1x8x4xf32> to vector<8x4xf32>
    %cst_36 = arith.constant dense<0.000000e+00> : vector<8x286xf32>
    %39 = tpu.matmul %38, %36, %cst_36 {dimension_numbers = #tpu.dot_dimension_numbers<[1], [0], [0], [1], [0, 0, 1, 1], [], []>} : vector<8x4xf32>, vector<4x286xf32>, vector<8x286xf32> -> vector<8x286xf32>
    %40 = arith.addf %34, %39 : vector<8x286xf32>
    %c0_37 = arith.constant 0 : index
    %c0_38 = arith.constant 0 : index
    %c37 = arith.constant 37 : index
    %41 = vector.load %arg1[%c0_37, %c0_38, %c37] : memref<1x4x324xf32, #tpu.memory_space<vmem>>, vector<1x4x286xf32>
    %42 = vector.shape_cast %41 : vector<1x4x286xf32> to vector<4x286xf32>
    %c7 = arith.constant 7 : index
    %c0_39 = arith.constant 0 : index
    %c0_40 = arith.constant 0 : index
    %43 = vector.load %arg2[%c7, %c0_39, %c0_40] : memref<9x8x4xf32, #tpu.memory_space<vmem>>, vector<1x8x4xf32>
    %44 = vector.shape_cast %43 : vector<1x8x4xf32> to vector<8x4xf32>
    %cst_41 = arith.constant dense<0.000000e+00> : vector<8x286xf32>
    %45 = tpu.matmul %44, %42, %cst_41 {dimension_numbers = #tpu.dot_dimension_numbers<[1], [0], [0], [1], [0, 0, 1, 1], [], []>} : vector<8x4xf32>, vector<4x286xf32>, vector<8x286xf32> -> vector<8x286xf32>
    %46 = arith.addf %40, %45 : vector<8x286xf32>
    %c0_42 = arith.constant 0 : index
    %c0_43 = arith.constant 0 : index
    %c38 = arith.constant 38 : index
    %47 = vector.load %arg1[%c0_42, %c0_43, %c38] : memref<1x4x324xf32, #tpu.memory_space<vmem>>, vector<1x4x286xf32>
    %48 = vector.shape_cast %47 : vector<1x4x286xf32> to vector<4x286xf32>
    %c8 = arith.constant 8 : index
    %c0_44 = arith.constant 0 : index
    %c0_45 = arith.constant 0 : index
    %49 = vector.load %arg2[%c8, %c0_44, %c0_45] : memref<9x8x4xf32, #tpu.memory_space<vmem>>, vector<1x8x4xf32>
    %50 = vector.shape_cast %49 : vector<1x8x4xf32> to vector<8x4xf32>
    %cst_46 = arith.constant dense<0.000000e+00> : vector<8x286xf32>
    %51 = tpu.matmul %50, %48, %cst_46 {dimension_numbers = #tpu.dot_dimension_numbers<[1], [0], [0], [1], [0, 0, 1, 1], [], []>} : vector<8x4xf32>, vector<4x286xf32>, vector<8x286xf32> -> vector<8x286xf32>
    %52 = arith.addf %46, %51 : vector<8x286xf32>
    %c0_47 = arith.constant 0 : index
    %c0_48 = arith.constant 0 : index
    %53 = vector.load %arg3[%c0_47, %c0_48] : memref<8x1xf32, #tpu.memory_space<vmem>>, vector<8x1xf32>
    %54 = vector.broadcast %53 : vector<8x1xf32> to vector<8x286xf32>
    %55 = arith.addf %52, %54 : vector<8x286xf32>
    %56 = vector.extract_strided_slice %55 {offsets = [0, 0], sizes = [8, 16], strides = [1, 1]} : vector<8x286xf32> to vector<8x16xf32>
    %c0_49 = arith.constant 0 : index
    %c0_50 = arith.constant 0 : index
    %c0_51 = arith.constant 0 : index
    %57 = vector.load %arg4[%c0_49, %c0_50, %c0_51] : memref<1x8x256xf32, #tpu.memory_space<vmem>>, vector<1x8x16xf32>
    %58 = vector.shape_cast %57 : vector<1x8x16xf32> to vector<8x16xf32>
    %59 = vector.shape_cast %56 : vector<8x16xf32> to vector<1x8x16xf32>
    tpu.vector_store %arg4[%c0_49, %c0_50, %c0_51], %59 {strides = array<i32>} : memref<1x8x256xf32, #tpu.memory_space<vmem>>, vector<1x8x16xf32>,
    %60 = vector.extract_strided_slice %55 {offsets = [0, 18], sizes = [8, 16], strides = [1, 1]} : vector<8x286xf32> to vector<8x16xf32>
    %c0_52 = arith.constant 0 : index
    %c0_53 = arith.constant 0 : index
    %c16 = arith.constant 16 : index
    %61 = vector.load %arg4[%c0_52, %c0_53, %c16] : memref<1x8x256xf32, #tpu.memory_space<vmem>>, vector<1x8x16xf32>
    %62 = vector.shape_cast %61 : vector<1x8x16xf32> to vector<8x16xf32>
    %63 = vector.shape_cast %60 : vector<8x16xf32> to vector<1x8x16xf32>
    tpu.vector_store %arg4[%c0_52, %c0_53, %c16], %63 {strides = array<i32>} : memref<1x8x256xf32, #tpu.memory_space<vmem>>, vector<1x8x16xf32>,
    %64 = vector.extract_strided_slice %55 {offsets = [0, 36], sizes = [8, 16], strides = [1, 1]} : vector<8x286xf32> to vector<8x16xf32>
    %c0_54 = arith.constant 0 : index
    %c0_55 = arith.constant 0 : index
    %c32 = arith.constant 32 : index
    %65 = vector.load %arg4[%c0_54, %c0_55, %c32] : memref<1x8x256xf32, #tpu.memory_space<vmem>>, vector<1x8x16xf32>
    %66 = vector.shape_cast %65 : vector<1x8x16xf32> to vector<8x16xf32>
    %67 = vector.shape_cast %64 : vector<8x16xf32> to vector<1x8x16xf32>
    tpu.vector_store %arg4[%c0_54, %c0_55, %c32], %67 {strides = array<i32>} : memref<1x8x256xf32, #tpu.memory_space<vmem>>, vector<1x8x16xf32>,
    %68 = vector.extract_strided_slice %55 {offsets = [0, 54], sizes = [8, 16], strides = [1, 1]} : vector<8x286xf32> to vector<8x16xf32>
    %c0_56 = arith.constant 0 : index
    %c0_57 = arith.constant 0 : index
    %c48 = arith.constant 48 : index
    %69 = vector.load %arg4[%c0_56, %c0_57, %c48] : memref<1x8x256xf32, #tpu.memory_space<vmem>>, vector<1x8x16xf32>
    %70 = vector.shape_cast %69 : vector<1x8x16xf32> to vector<8x16xf32>
    %71 = vector.shape_cast %68 : vector<8x16xf32> to vector<1x8x16xf32>
    tpu.vector_store %arg4[%c0_56, %c0_57, %c48], %71 {strides = array<i32>} : memref<1x8x256xf32, #tpu.memory_space<vmem>>, vector<1x8x16xf32>,
    %72 = vector.extract_strided_slice %55 {offsets = [0, 72], sizes = [8, 16], strides = [1, 1]} : vector<8x286xf32> to vector<8x16xf32>
    %c0_58 = arith.constant 0 : index
    %c0_59 = arith.constant 0 : index
    %c64 = arith.constant 64 : index
    %73 = vector.load %arg4[%c0_58, %c0_59, %c64] : memref<1x8x256xf32, #tpu.memory_space<vmem>>, vector<1x8x16xf32>
    %74 = vector.shape_cast %73 : vector<1x8x16xf32> to vector<8x16xf32>
    %75 = vector.shape_cast %72 : vector<8x16xf32> to vector<1x8x16xf32>
    tpu.vector_store %arg4[%c0_58, %c0_59, %c64], %75 {strides = array<i32>} : memref<1x8x256xf32, #tpu.memory_space<vmem>>, vector<1x8x16xf32>,
    %76 = vector.extract_strided_slice %55 {offsets = [0, 90], sizes = [8, 16], strides = [1, 1]} : vector<8x286xf32> to vector<8x16xf32>
    %c0_60 = arith.constant 0 : index
    %c0_61 = arith.constant 0 : index
    %c80 = arith.constant 80 : index
    %77 = vector.load %arg4[%c0_60, %c0_61, %c80] : memref<1x8x256xf32, #tpu.memory_space<vmem>>, vector<1x8x16xf32>
    %78 = vector.shape_cast %77 : vector<1x8x16xf32> to vector<8x16xf32>
    %79 = vector.shape_cast %76 : vector<8x16xf32> to vector<1x8x16xf32>
    tpu.vector_store %arg4[%c0_60, %c0_61, %c80], %79 {strides = array<i32>} : memref<1x8x256xf32, #tpu.memory_space<vmem>>, vector<1x8x16xf32>,
    %80 = vector.extract_strided_slice %55 {offsets = [0, 108], sizes = [8, 16], strides = [1, 1]} : vector<8x286xf32> to vector<8x16xf32>
    %c0_62 = arith.constant 0 : index
    %c0_63 = arith.constant 0 : index
    %c96 = arith.constant 96 : index
    %81 = vector.load %arg4[%c0_62, %c0_63, %c96] : memref<1x8x256xf32, #tpu.memory_space<vmem>>, vector<1x8x16xf32>
    %82 = vector.shape_cast %81 : vector<1x8x16xf32> to vector<8x16xf32>
    %83 = vector.shape_cast %80 : vector<8x16xf32> to vector<1x8x16xf32>
    tpu.vector_store %arg4[%c0_62, %c0_63, %c96], %83 {strides = array<i32>} : memref<1x8x256xf32, #tpu.memory_space<vmem>>, vector<1x8x16xf32>,
    %84 = vector.extract_strided_slice %55 {offsets = [0, 126], sizes = [8, 16], strides = [1, 1]} : vector<8x286xf32> to vector<8x16xf32>
    %c0_64 = arith.constant 0 : index
    %c0_65 = arith.constant 0 : index
    %c112 = arith.constant 112 : index
    %85 = vector.load %arg4[%c0_64, %c0_65, %c112] : memref<1x8x256xf32, #tpu.memory_space<vmem>>, vector<1x8x16xf32>
    %86 = vector.shape_cast %85 : vector<1x8x16xf32> to vector<8x16xf32>
    %87 = vector.shape_cast %84 : vector<8x16xf32> to vector<1x8x16xf32>
    tpu.vector_store %arg4[%c0_64, %c0_65, %c112], %87 {strides = array<i32>} : memref<1x8x256xf32, #tpu.memory_space<vmem>>, vector<1x8x16xf32>,
    %88 = vector.extract_strided_slice %55 {offsets = [0, 144], sizes = [8, 16], strides = [1, 1]} : vector<8x286xf32> to vector<8x16xf32>
    %c0_66 = arith.constant 0 : index
    %c0_67 = arith.constant 0 : index
    %c128 = arith.constant 128 : index
    %89 = vector.load %arg4[%c0_66, %c0_67, %c128] : memref<1x8x256xf32, #tpu.memory_space<vmem>>, vector<1x8x16xf32>
    %90 = vector.shape_cast %89 : vector<1x8x16xf32> to vector<8x16xf32>
    %91 = vector.shape_cast %88 : vector<8x16xf32> to vector<1x8x16xf32>
    tpu.vector_store %arg4[%c0_66, %c0_67, %c128], %91 {strides = array<i32>} : memref<1x8x256xf32, #tpu.memory_space<vmem>>, vector<1x8x16xf32>,
    %92 = vector.extract_strided_slice %55 {offsets = [0, 162], sizes = [8, 16], strides = [1, 1]} : vector<8x286xf32> to vector<8x16xf32>
    %c0_68 = arith.constant 0 : index
    %c0_69 = arith.constant 0 : index
    %c144 = arith.constant 144 : index
    %93 = vector.load %arg4[%c0_68, %c0_69, %c144] : memref<1x8x256xf32, #tpu.memory_space<vmem>>, vector<1x8x16xf32>
    %94 = vector.shape_cast %93 : vector<1x8x16xf32> to vector<8x16xf32>
    %95 = vector.shape_cast %92 : vector<8x16xf32> to vector<1x8x16xf32>
    tpu.vector_store %arg4[%c0_68, %c0_69, %c144], %95 {strides = array<i32>} : memref<1x8x256xf32, #tpu.memory_space<vmem>>, vector<1x8x16xf32>,
    %96 = vector.extract_strided_slice %55 {offsets = [0, 180], sizes = [8, 16], strides = [1, 1]} : vector<8x286xf32> to vector<8x16xf32>
    %c0_70 = arith.constant 0 : index
    %c0_71 = arith.constant 0 : index
    %c160 = arith.constant 160 : index
    %97 = vector.load %arg4[%c0_70, %c0_71, %c160] : memref<1x8x256xf32, #tpu.memory_space<vmem>>, vector<1x8x16xf32>
    %98 = vector.shape_cast %97 : vector<1x8x16xf32> to vector<8x16xf32>
    %99 = vector.shape_cast %96 : vector<8x16xf32> to vector<1x8x16xf32>
    tpu.vector_store %arg4[%c0_70, %c0_71, %c160], %99 {strides = array<i32>} : memref<1x8x256xf32, #tpu.memory_space<vmem>>, vector<1x8x16xf32>,
    %100 = vector.extract_strided_slice %55 {offsets = [0, 198], sizes = [8, 16], strides = [1, 1]} : vector<8x286xf32> to vector<8x16xf32>
    %c0_72 = arith.constant 0 : index
    %c0_73 = arith.constant 0 : index
    %c176 = arith.constant 176 : index
    %101 = vector.load %arg4[%c0_72, %c0_73, %c176] : memref<1x8x256xf32, #tpu.memory_space<vmem>>, vector<1x8x16xf32>
    %102 = vector.shape_cast %101 : vector<1x8x16xf32> to vector<8x16xf32>
    %103 = vector.shape_cast %100 : vector<8x16xf32> to vector<1x8x16xf32>
    tpu.vector_store %arg4[%c0_72, %c0_73, %c176], %103 {strides = array<i32>} : memref<1x8x256xf32, #tpu.memory_space<vmem>>, vector<1x8x16xf32>,
    %104 = vector.extract_strided_slice %55 {offsets = [0, 216], sizes = [8, 16], strides = [1, 1]} : vector<8x286xf32> to vector<8x16xf32>
    %c0_74 = arith.constant 0 : index
    %c0_75 = arith.constant 0 : index
    %c192 = arith.constant 192 : index
    %105 = vector.load %arg4[%c0_74, %c0_75, %c192] : memref<1x8x256xf32, #tpu.memory_space<vmem>>, vector<1x8x16xf32>
    %106 = vector.shape_cast %105 : vector<1x8x16xf32> to vector<8x16xf32>
    %107 = vector.shape_cast %104 : vector<8x16xf32> to vector<1x8x16xf32>
    tpu.vector_store %arg4[%c0_74, %c0_75, %c192], %107 {strides = array<i32>} : memref<1x8x256xf32, #tpu.memory_space<vmem>>, vector<1x8x16xf32>,
    %108 = vector.extract_strided_slice %55 {offsets = [0, 234], sizes = [8, 16], strides = [1, 1]} : vector<8x286xf32> to vector<8x16xf32>
    %c0_76 = arith.constant 0 : index
    %c0_77 = arith.constant 0 : index
    %c208 = arith.constant 208 : index
    %109 = vector.load %arg4[%c0_76, %c0_77, %c208] : memref<1x8x256xf32, #tpu.memory_space<vmem>>, vector<1x8x16xf32>
    %110 = vector.shape_cast %109 : vector<1x8x16xf32> to vector<8x16xf32>
    %111 = vector.shape_cast %108 : vector<8x16xf32> to vector<1x8x16xf32>
    tpu.vector_store %arg4[%c0_76, %c0_77, %c208], %111 {strides = array<i32>} : memref<1x8x256xf32, #tpu.memory_space<vmem>>, vector<1x8x16xf32>,
    %112 = vector.extract_strided_slice %55 {offsets = [0, 252], sizes = [8, 16], strides = [1, 1]} : vector<8x286xf32> to vector<8x16xf32>
    %c0_78 = arith.constant 0 : index
    %c0_79 = arith.constant 0 : index
    %c224 = arith.constant 224 : index
    %113 = vector.load %arg4[%c0_78, %c0_79, %c224] : memref<1x8x256xf32, #tpu.memory_space<vmem>>, vector<1x8x16xf32>
    %114 = vector.shape_cast %113 : vector<1x8x16xf32> to vector<8x16xf32>
    %115 = vector.shape_cast %112 : vector<8x16xf32> to vector<1x8x16xf32>
    tpu.vector_store %arg4[%c0_78, %c0_79, %c224], %115 {strides = array<i32>} : memref<1x8x256xf32, #tpu.memory_space<vmem>>, vector<1x8x16xf32>,
    %116 = vector.extract_strided_slice %55 {offsets = [0, 270], sizes = [8, 16], strides = [1, 1]} : vector<8x286xf32> to vector<8x16xf32>
    %c0_80 = arith.constant 0 : index
    %c0_81 = arith.constant 0 : index
    %c240 = arith.constant 240 : index
    %117 = vector.load %arg4[%c0_80, %c0_81, %c240] : memref<1x8x256xf32, #tpu.memory_space<vmem>>, vector<1x8x16xf32>
    %118 = vector.shape_cast %117 : vector<1x8x16xf32> to vector<8x16xf32>
    %119 = vector.shape_cast %116 : vector<8x16xf32> to vector<1x8x16xf32>
    tpu.vector_store %arg4[%c0_80, %c0_81, %c240], %119 {strides = array<i32>} : memref<1x8x256xf32, #tpu.memory_space<vmem>>, vector<1x8x16xf32>,
    return
  }
  func.func @transform_0(%arg0: i32) -> (i32, i32, i32) {
    %c0_i32 = arith.constant 0 : i32
    %c0_i32_0 = arith.constant 0 : i32
    %c0_i32_1 = arith.constant 0 : i32
    return %arg0, %c0_i32, %c0_i32_0 : i32, i32, i32
  }
  func.func @transform_1(%arg0: i32) -> (i32, i32, i32) {
    %c0_i32 = arith.constant 0 : i32
    %c0_i32_0 = arith.constant 0 : i32
    %c0_i32_1 = arith.constant 0 : i32
    %c0_i32_2 = arith.constant 0 : i32
    return %c0_i32, %c0_i32_0, %c0_i32_1 : i32, i32, i32
  }
  func.func @transform_2(%arg0: i32) -> (i32, i32) {
    %c0_i32 = arith.constant 0 : i32
    %c0_i32_0 = arith.constant 0 : i32
    %c0_i32_1 = arith.constant 0 : i32
    return %c0_i32, %c0_i32_0 : i32, i32
  }
  func.func @transform_3(%arg0: i32) -> (i32, i32, i32) {
    %c0_i32 = arith.constant 0 : i32
    %c0_i32_0 = arith.constant 0 : i32
    %c0_i32_1 = arith.constant 0 : i32
    return %arg0, %c0_i32, %c0_i32_0 : i32, i32, i32
  }
}

</mosaic_0001>

<bundles_post_ra>
// kernel: tpu_custom_call.1
= control target key start
LH: loop header
LB: loop body
LE: loop exit
PB: predicated region body
PF: predicated region fallthrough
CT: control target
= control target key end

     0   :  { %8 = vsyncpa [#allocation3], 0  ;;  %s2429_s0 = inlined_call_operand.vmem [shape: f32[2,4,324], index: 0, kind: input, shape index: {}]   ;;  %s2430_s1 = inlined_call_operand.vmem [shape: f32[9,8,4], index: 1, kind: input, shape index: {}]   ;;  %s2431_s2 = inlined_call_operand.vmem [shape: f32[8,1], index: 2, kind: input, shape index: {}]   ;;  %s2432_s3 = inlined_call_operand.hbm [shape: f32[2,8,256], index: 3, kind: output, shape index: {}]  }
   0x1   :  { %10 = vsyncpa [#allocation3 + $0x1], 0  ;;  %s2133_s12 = smov 0   ;;  %s2135_s13 = smov 0  }
   0x2   :  { %s2137_s14 = smov 0   ;;  %s2139_s15 = smov 0  }
   0x3 LB: > { %s2154_s16 = sadd.s32 4294967295, %s2087_s15   ;;  %s1834_s17 = sadd.s32 4294967294, %s2087_s15   ;;  %s2087_s15 = sphi %s2139_s15, %s2438_s15   ;;  %s2083_s14 = sphi %s2137_s14, %s2437_s14   ;;  %s2079_s13 = sphi %s2135_s13, %s2436_s13   ;;  %s2075_s12 = sphi %s2133_s12, %s2435_s12  }
   0x4   : > { %s2158_s18 = sadd.s32 1, %s2087_s15   ;;  %s91_s19 = sadd.s32 1, %s2083_s14 }
   0x5   : > { %s88_s20 = ssub.s32 %s2087_s15, %s2158_s18  ;;  %p101_p0 = scmp.ne.s32.totalorder %s2083_s14, %s2079_s13 }
   0x6   : > { %p89_p1 = scmp.eq.s32.totalorder %s88_s20, 0  ;;  %p102_p2 = scmp.eq.s32.totalorder %s2154_s16, 1 }
   0x7   : > { %p107_p3 = scmp.ne.s32.totalorder %s2079_s13, %s2075_s12  ;;  %p108_p4 = scmp.eq.s32.totalorder %s1834_s17, 1 }
   0x8   : > { %s2169_s21 = scalar_select %p89_p1, %s2083_s14, %s91_s19  }
   0x9   : > { %p2171_p5 = por %p102_p2, %p101_p0  ;;  %p2175_p6 = por %p108_p4, %p107_p3 }
   0xa   : > { %p1837_p7 = scmp.ge.s32.totalorder %s2087_s15, 1  ;;  %p140_p8 = scmp.lt.s32.totalorder %s2087_s15, 3 }
   0xc   : > { %p141_p9 = pnand %p1837_p7, %p140_p8 }
   0xd   : > { %p164_p10 = scmp.lt.s32.totalorder (!%p141_p9), %s2154_s16, 1  ;;  %s2091_s29 = smov (!%p141_p9), 127  }
   0xe   : > { %144 = sbr.rel (%p141_p9) target bundleno = 545 (0x221), region = 32  ;;  %s2092_s30 = smov (!%p141_p9), 126  }
   0xf   : > { %s2093_s4 = smov (!%p141_p9), 110   ;;  %s2094_s5 = smov (!%p141_p9), 109  }
  0x10   : > { %s2095_s6 = smov (!%p141_p9), 108   ;;  %s2096_s7 = smov (!%p141_p9), 92  }
  0x11   : > { %s2098_s8 = smov (!%p141_p9), 91   ;;  %s2099_s9 = smov (!%p141_p9), 90  }
  0x12   : > { %s2100_s26 = smov (!%p141_p9), 100   ;;  %s2108_s10 = smov (!%p141_p9), 116  }
  0x13   : > { %v2089_v0 = vmov 0.0   ;;  %vm2090_vm0 = vmmov 0   ;;  %s165_s24 = scalar_select %p164_p10, %s2154_s16, 1  ;;  %v2097_v10 = vmov 0   ;;  %v1671_v12 = vld [vmem:[%s2431_s2] sm:$0xff]  ;;  %vm190_vm1 = vcmask 1043456  }
  0x14   : > { %1917 = vmatprep.subr.mxu1 %v2089_v0  ;;  %1919 = vmatprep.mubr.msk.f32.mxu1 %vm2090_vm0, %v2089_v0  ;;  %v1840_v13 = vld [vmem:[%s2430_s1 + $0x8] sm:$0xff]  ;;  %vm186_vm2 = vcmask 31744   ;;  %v171_v16 = vld [vmem:[%s2430_s1] sm:$0xff]  ;;  %vm183_vm3 = vcmask 1039360   ;;  %v1851_v19 = vld [vmem:[%s2430_s1 + $0x10] sm:$0xff]  ;;  %vm501_vm4 = vcmask 1031168  }
  0x15   : > { %261 = vmatprep.mubr.f32.mxu0 %v2089_v0  ;;  %s1962_s25 = smul.u32 12, %s165_s24  ;;  %2025 = vset.pattern.permute.xlu0 %v2097_v10  ;;  %v1857_v26 = vld [vmem:[%s2430_s1 + $0x18] sm:$0xff]  ;;  %vm670_vm5 = vcmask 900096   ;;  %vm839_vm6 = vcmask 891904   ;;  %v1863_v35 = vld [vmem:[%s2430_s1 + $0x20] sm:$0xff]  ;;  %vm1008_vm7 = vcmask 883712  }
  0x16   : > { %v1869_v40 = vld [vmem:[%s2430_s1 + $0x28] sm:$0xff]  ;;  %vm1177_vm8 = vcmask 752640   ;;  %v1875_v45 = vld [vmem:[%s2430_s1 + $0x30] sm:$0xff]  ;;  %vm1346_vm9 = vcmask 744448   ;;  %v1881_v50 = vld [vmem:[%s2430_s1 + $0x38] sm:$0xff]  ;;  %vm1515_vm10 = vcmask 736256  }
  0x17   : > { %s2190_s28 = scalar_lea.vmem %s2429_s0, %s1962_s25  ;;  %v1887_v57 = vld [vmem:[%s2430_s1 + $0x40] sm:$0xff]  ;;  %s161_s24 = sand.u32 1, %s2079_s13   ;;  %vm1680_vm11 = vcmask 130048   ;;  %vm1686_vm12 = vcmask 261248   ;;  %vm1691_vm13 = vcmask 392448   ;;  %vm1696_vm14 = vcmask 523648  }
  0x18   : > { %v170_v1 = vld [vmem:[%s2190_s28 + $0x8] sm:$0xf]  ;;  %v2194_v2 = vld [vmem:[%s2190_s28] sm:$0xff]  ;;  %s1838_s25 = sshll.u32 %s161_s24, 4  ;;  %s2109_s11 = smov 102   ;;  %vm1701_vm15 = vcmask 654848  }
  0x19   : > { %181 = vrot.lane.b32.xlu0 %v170_v1, %s2091_s29  ;;  %177 = vrot.lane.b32.xlu1 %v2194_v2, %s2091_s29  ;;  %v489_v3 = vld [vmem:[%s2190_s28 + $0x8] sm:$0xf]  ;;  %v2201_v4 = vcombine.high %v2194_v2, %v2194_v2  ;;  %s2352_s27 = scalar_lea.vmem [#allocation2], %s1838_s25  ;;  %s2110_s17 = smov 112  }
  0x1a   : > { %v658_v5 = vld [vmem:[%s2190_s28 + $0x8] sm:$0xf]  ;;  %s1775_s19 = sshll.u32 %s2352_s27, 4  ;;  %s1776_s19 = int_to_ptr.vmem [resolvable:$true] %s1775_s19 }
  0x1b   : > { %v827_v6 = vld [vmem:[%s2190_s28 + $0x8] sm:$0xf] }
  0x1c   : > { %v996_v7 = vld [vmem:[%s2190_s28 + $0x8] sm:$0xf] }
  0x1d   : > { %499 = vrot.lane.b32.xlu0 %v489_v3, %s2092_s30  ;;  %495 = vrot.lane.b32.xlu1 %v2194_v2, %s2092_s30  ;;  %v1165_v8 = vld [vmem:[%s2190_s28 + $0x8] sm:$0xf] }
  0x1e   : > { %v1334_v9 = vld [vmem:[%s2190_s28 + $0x8] sm:$0xf] }
  0x1f   : > { %v1503_v11 = vld [vmem:[%s2190_s28 + $0x8] sm:$0xf]  ;;  %s2101_s28 = smov 114  }
  0x21   : > { %497 = vrot.lane.b32.xlu1 %v2201_v4, %s2092_s30  ;;  %179 = vrot.lane.b32.xlu0 %v2201_v4, %s2091_s29  ;;  %s2102_s29 = smov 124  }
  0x25   : > { %668 = vrot.lane.b32.xlu1 %v658_v5, %s2093_s4  ;;  %666 = vrot.lane.b32.xlu0 %v2201_v4, %s2093_s4 }
  0x29   : > { %835 = vrot.lane.b32.xlu1 %v2201_v4, %s2094_s5  ;;  %664 = vrot.lane.b32.xlu0 %v2194_v2, %s2093_s4 }
  0x2d   : > { %833 = vrot.lane.b32.xlu1 %v2194_v2, %s2094_s5  ;;  %837 = vrot.lane.b32.xlu0 %v827_v6, %s2094_s5  ;;  %s2103_s5 = smov 122  }
  0x31   : > { %1006 = vrot.lane.b32.xlu1 %v996_v7, %s2095_s6  ;;  %1004 = vrot.lane.b32.xlu0 %v2201_v4, %s2095_s6 }
  0x35   : > { %1173 = vrot.lane.b32.xlu1 %v2201_v4, %s2096_s7  ;;  %1002 = vrot.lane.b32.xlu0 %v2194_v2, %s2095_s6 }
  0x39   : > { %1171 = vrot.lane.b32.xlu1 %v2194_v2, %s2096_s7  ;;  %1175 = vrot.lane.b32.xlu0 %v1165_v8, %s2096_s7  ;;  %s2104_s7 = smov 120  }
  0x3d   : > { %1344 = vrot.lane.b32.xlu1 %v1334_v9, %s2098_s8  ;;  %1342 = vrot.lane.b32.xlu0 %v2201_v4, %s2098_s8 }
  0x41   : > { %1511 = vrot.lane.b32.xlu1 %v2201_v4, %s2099_s9  ;;  %1340 = vrot.lane.b32.xlu0 %v2194_v2, %s2098_s8  ;;  %s2105_s8 = smov 106  }
  0x45   : > { %1509 = vrot.lane.b32.xlu1 %v2194_v2, %s2099_s9  ;;  %1513 = vrot.lane.b32.xlu0 %v1503_v11, %s2099_s9  ;;  %s2107_s9 = smov 104  }
  0x49   : > { %1674 = vperm.xlu0 %2025, %v1671_v12  }
  0x8b   : > { %v182_v14 = vpop.permute.xlu0 %181  ;;  %v178_v15 = vpop.permute.xlu1 %177 }
  0x8c   : > { %1918 = vmatpush3.msk.msra.mxu1 %vm190_vm1, %v182_v14 }
  0x8d   : > { %1920 = vmatmul.mubr.msk.f32.vlgmr.msra.gmra.mxu1 %vm186_vm2, %v1840_v13  ;;  %1922 = vmatprep.subr.mxu1 %v2089_v0 }
  0x8e   : > { %1923 = vmatpush3.msk.msra.mxu1 %vm190_vm1, %v170_v1  ;;  %1924 = vmatprep.mubr.msk.f32.mxu1 %vm2090_vm0, %v2089_v0 }
  0x8f   : > { %v500_v17 = vpop.permute.xlu0 %499  ;;  %v496_v18 = vpop.permute.xlu1 %495  ;;  %1927 = vmatprep.subr.mxu1 %v2089_v0 }
  0x91   : > { %1925 = vmatmul.mubr.msk.f32.vlgmr.msra.gmra.mxu1 %vm186_vm2, %v171_v16 }
  0x92   : > { %1928 = vmatpush3.msk.msra.mxu1 %vm190_vm1, %v500_v17  ;;  %1929 = vmatprep.mubr.msk.f32.mxu1 %vm2090_vm0, %v2089_v0 }
  0x93   : > { %v498_v20 = vpop.permute.xlu1 %497  ;;  %v180_v21 = vpop.permute.xlu0 %179  ;;  %1932 = vmatprep.subr.mxu1 %v2089_v0 }
  0x94   : > { %v185_v22 = vsel %vm183_vm3, %v180_v21, %v182_v14  ;;  %v184_v23 = vsel %vm183_vm3, %v178_v15, %v180_v21  ;;  %v503_v27 = vsel %vm501_vm4, %v498_v20, %v500_v17  ;;  %v502_v28 = vsel %vm501_vm4, %v496_v18, %v498_v20 }
  0x95   : > { %1841 = vmatprep.subr.msk.mxu0 %vm190_vm1, %v185_v22  ;;  %1930 = vmatmul.mubr.msk.f32.vlgmr.msra.gmra.mxu1 %vm186_vm2, %v1851_v19  ;;  %vm1721_vm3 = vcmask 1048448   ;;  %vm1718_vm4 = vcmask 932864  }
  0x96   : > { %1842 = vmatpush1.msk.msra.mxu0 %vm190_vm1, %v184_v23  ;;  %1934 = vmatprep.mubr.msk.f32.mxu1 %vm2090_vm0, %v2089_v0 }
  0x97   : > { %v669_v24 = vpop.permute.xlu1 %668  ;;  %1843 = vmatmul.mubr.msk.f32.vlgmr.msra.gmra.mxu0 %vm186_vm2, %v1840_v13  ;;  %1846 = vmatprep.subr.msk.mxu0 %vm190_vm1, %v2201_v4  ;;  %v667_v25 = vpop.permute.xlu0 %666 }
  0x98   : > { %1847 = vmatpush1.msk.msra.mxu0 %vm190_vm1, %v2194_v2  ;;  %1933 = vmatpush3.msk.msra.mxu1 %vm190_vm1, %v669_v24  ;;  %v672_v31 = vsel %vm670_vm5, %v667_v25, %v669_v24 }
  0x99   : > { %1852 = vmatprep.subr.msk.mxu0 %vm190_vm1, %v503_v27  ;;  %411 = vmatprep.mubr.f32.mxu0 %v2089_v0 }
  0x9a   : > { %1937 = vmatprep.subr.mxu1 %v2089_v0  ;;  %1935 = vmatmul.mubr.msk.f32.vlgmr.msra.gmra.mxu1 %vm186_vm2, %v1857_v26 }
  0x9b   : > { %v836_v29 = vpop.permute.xlu1 %835  ;;  %1848 = vmatmul.mubr.msk.f32.vlgmr.msra.gmra.mxu0 %vm186_vm2, %v171_v16  ;;  %v665_v30 = vpop.permute.xlu0 %664  ;;  %1939 = vmatprep.mubr.msk.f32.mxu1 %vm2090_vm0, %v2089_v0 }
  0x9c   : > { %1853 = vmatpush1.msk.msra.mxu0 %vm190_vm1, %v502_v28  ;;  %577 = vmatprep.mubr.f32.mxu0 %v2089_v0  ;;  %v671_v32 = vsel %vm670_vm5, %v665_v30, %v667_v25 }
  0x9d   : > { %1858 = vmatprep.subr.msk.mxu0 %vm190_vm1, %v672_v31 }
  0x9f   : > { %v834_v33 = vpop.permute.xlu1 %833  ;;  %1854 = vmatmul.mubr.msk.f32.vlgmr.msra.gmra.mxu0 %vm186_vm2, %v1851_v19  ;;  %v838_v34 = vpop.permute.xlu0 %837 }
  0xa0   : > { %1859 = vmatpush1.msk.msra.mxu0 %vm190_vm1, %v671_v32  ;;  %v841_v36 = vsel %vm839_vm6, %v836_v29, %v838_v34  ;;  %1938 = vmatpush3.msk.msra.mxu1 %vm190_vm1, %v838_v34  ;;  %v840_v37 = vsel %vm839_vm6, %v834_v33, %v836_v29 }
  0xa1   : > { %1864 = vmatprep.subr.msk.mxu0 %vm190_vm1, %v841_v36  ;;  %746 = vmatprep.mubr.f32.mxu0 %v2089_v0 }
  0xa2   : > { %1942 = vmatprep.subr.mxu1 %v2089_v0  ;;  %1940 = vmatmul.mubr.msk.f32.vlgmr.msra.gmra.mxu1 %vm186_vm2, %v1863_v35 }
  0xa3   : > { %v1007_v38 = vpop.permute.xlu1 %1006  ;;  %1860 = vmatmul.mubr.msk.f32.vlgmr.msra.gmra.mxu0 %vm186_vm2, %v1857_v26  ;;  %v1005_v39 = vpop.permute.xlu0 %1004  ;;  %1944 = vmatprep.mubr.msk.f32.mxu1 %vm2090_vm0, %v2089_v0 }
  0xa4   : > { %1865 = vmatpush1.msk.msra.mxu0 %vm190_vm1, %v840_v37  ;;  %v1010_v41 = vsel %vm1008_vm7, %v1005_v39, %v1007_v38  ;;  %1943 = vmatpush3.msk.msra.mxu1 %vm190_vm1, %v1007_v38 }
  0xa5   : > { %1870 = vmatprep.subr.msk.mxu0 %vm190_vm1, %v1010_v41  ;;  %915 = vmatprep.mubr.f32.mxu0 %v2089_v0 }
  0xa6   : > { %1945 = vmatmul.mubr.msk.f32.vlgmr.msra.gmra.mxu1 %vm186_vm2, %v1869_v40  ;;  %1947 = vmatprep.subr.mxu1 %v2089_v0 }
  0xa7   : > { %v1174_v42 = vpop.permute.xlu1 %1173  ;;  %1866 = vmatmul.mubr.msk.f32.vlgmr.msra.gmra.mxu0 %vm186_vm2, %v1863_v35  ;;  %v1003_v43 = vpop.permute.xlu0 %1002  ;;  %1949 = vmatprep.mubr.msk.f32.mxu1 %vm2090_vm0, %v2089_v0 }
  0xa8   : > { %v1009_v44 = vsel %vm1008_vm7, %v1003_v43, %v1005_v39  ;;  %1084 = vmatprep.mubr.f32.mxu0 %v2089_v0 }
  0xa9   : > { %1871 = vmatpush1.msk.msra.mxu0 %vm190_vm1, %v1009_v44 }
  0xab   : > { %v1172_v46 = vpop.permute.xlu1 %1171  ;;  %1872 = vmatmul.mubr.msk.f32.vlgmr.msra.gmra.mxu0 %vm186_vm2, %v1869_v40  ;;  %v1176_v47 = vpop.permute.xlu0 %1175 }
  0xac   : > { %v1178_v48 = vsel %vm1177_vm8, %v1172_v46, %v1174_v42  ;;  %v1179_v49 = vsel %vm1177_vm8, %v1174_v42, %v1176_v47  ;;  %1948 = vmatpush3.msk.msra.mxu1 %vm190_vm1, %v1176_v47  ;;  %1253 = vmatprep.mubr.f32.mxu0 %v2089_v0 }
  0xad   : > { %1876 = vmatprep.subr.msk.mxu0 %vm190_vm1, %v1179_v49  ;;  %1950 = vmatmul.mubr.msk.f32.vlgmr.msra.gmra.mxu1 %vm186_vm2, %v1875_v45 }
  0xae   : > { %1877 = vmatpush1.msk.msra.mxu0 %vm190_vm1, %v1178_v48  ;;  %1952 = vmatprep.subr.mxu1 %v2089_v0 }
  0xaf   : > { %v1345_v51 = vpop.permute.xlu1 %1344  ;;  %1878 = vmatmul.mubr.msk.f32.vlgmr.msra.gmra.mxu0 %vm186_vm2, %v1875_v45  ;;  %v1343_v52 = vpop.permute.xlu0 %1342  ;;  %1954 = vmatprep.mubr.msk.f32.mxu1 %vm2090_vm0, %v2089_v0 }
  0xb0   : > { %v1348_v53 = vsel %vm1346_vm9, %v1343_v52, %v1345_v51  ;;  %1953 = vmatpush3.msk.msra.mxu1 %vm190_vm1, %v1345_v51  ;;  %1422 = vmatprep.mubr.f32.mxu0 %v2089_v0 }
  0xb1   : > { %1882 = vmatprep.subr.msk.mxu0 %vm190_vm1, %v1348_v53  ;;  %1955 = vmatmul.mubr.msk.f32.vlgmr.msra.gmra.mxu1 %vm186_vm2, %v1881_v50 }
  0xb2   : > { %1957 = vmatprep.subr.mxu1 %v2089_v0  ;;  %1959 = vmatprep.mubr.msk.f32.mxu1 %vm2090_vm0, %v2089_v0  ;;  %vm1706_vm0 = vcmask 786048  }
  0xb3   : > { %v1512_v54 = vpop.permute.xlu1 %1511  ;;  %v1341_v55 = vpop.permute.xlu0 %1340 }
  0xb4   : > { %v1347_v56 = vsel %vm1346_vm9, %v1341_v55, %v1343_v52 }
  0xb5   : > { %1883 = vmatpush1.msk.msra.mxu0 %vm190_vm1, %v1347_v56 }
  0xb6   : > { %1884 = vmatmul.mubr.msk.f32.vlgmr.msra.gmra.mxu0 %vm186_vm2, %v1881_v50 }
  0xb7   : > { %v1510_v58 = vpop.permute.xlu1 %1509  ;;  %v1514_v59 = vpop.permute.xlu0 %1513  ;;  %1591 = vmatprep.mubr.f32.mxu0 %v2089_v0 }
  0xb8   : > { %v1516_v60 = vsel %vm1515_vm10, %v1510_v58, %v1512_v54  ;;  %v1517_v61 = vsel %vm1515_vm10, %v1512_v54, %v1514_v59  ;;  %1958 = vmatpush3.msk.msra.mxu1 %vm190_vm1, %v1514_v59 }
  0xb9   : > { %1888 = vmatprep.subr.msk.mxu0 %vm190_vm1, %v1517_v61  ;;  %1960 = vmatmul.mubr.msk.f32.vlgmr.msra.gmra.mxu1 %vm186_vm2, %v1887_v57 }
  0xba   : > { %1889 = vmatpush1.msk.msra.mxu0 %vm190_vm1, %v1516_v60  ;;  %vm1711_vm1 = vcmask 917248  }
  0xbb   : > { %1890 = vmatmul.mubr.msk.f32.vlgmr.msra.gmra.mxu0 %vm186_vm2, %v1887_v57  ;;  %vm1752_vm2 = vcmask 818176  }
  0xc4   : > { %v1675_v48 = vpop.permute.xlu0 %1674 }
 0x14d   : > { %v334_v62 = vpop.f32.mrf.mxu1 }
 0x14f   : > { %v1921_v63 = vpop.f32.mrf.mxu1 }
 0x151   : > { %v484_v1 = vpop.f32.mrf.mxu1 }
 0x152   : > { %v485_v14 = vadd.f32 %v484_v1, %v334_v62 }
 0x153   : > { %v1926_v2 = vpop.f32.mrf.mxu1 }
 0x155   : > { %v650_v3 = vpop.f32.mrf.mxu1 }
 0x156   : > { %v656_v19 = vadd.f32 %v650_v3, %v485_v14 }
 0x157   : > { %v263_v4 = vpop.f32.mrf.mxu0  ;;  %v1931_v5 = vpop.f32.mrf.mxu1 }
 0x159   : > { %v265_v0 = vpop.f32.mrf.mxu0 }
 0x15a   : > { %v819_v6 = vpop.f32.mrf.mxu1 }
 0x15b   : > { %v413_v7 = vpop.f32.mrf.mxu0  ;;  %v825_v23 = vadd.f32 %v819_v6, %v656_v19 }
 0x15c   : > { %v1936_v8 = vpop.f32.mrf.mxu1  ;;  %v414_v26 = vadd.f32 %v413_v7, %v263_v4 }
 0x15d   : > { %v415_v9 = vpop.f32.mrf.mxu0 }
 0x15e   : > { %v416_v32 = vadd.f32 %v415_v9, %v265_v0 }
 0x15f   : > { %v579_v10 = vpop.f32.mrf.mxu0 }
 0x160   : > { %v654_v28 = vadd.f32 %v579_v10, %v414_v26 }
 0x161   : > { %v581_v11 = vpop.f32.mrf.mxu0 }
 0x162   : > { %v988_v12 = vpop.f32.mrf.mxu1  ;;  %v655_v35 = vadd.f32 %v581_v11, %v416_v32 }
 0x163   : > { %v748_v13 = vpop.f32.mrf.mxu0  ;;  %v994_v29 = vadd.f32 %v988_v12, %v825_v23 }
 0x164   : > { %v1941_v15 = vpop.f32.mrf.mxu1  ;;  %v823_v33 = vadd.f32 %v748_v13, %v654_v28 }
 0x165   : > { %v750_v16 = vpop.f32.mrf.mxu0 }
 0x166   : > { %v1157_v17 = vpop.f32.mrf.mxu1  ;;  %v824_v39 = vadd.f32 %v750_v16, %v655_v35 }
 0x167   : > { %v917_v18 = vpop.f32.mrf.mxu0  ;;  %v1163_v37 = vadd.f32 %v1157_v17, %v994_v29 }
 0x168   : > { %v1946_v20 = vpop.f32.mrf.mxu1  ;;  %v992_v36 = vadd.f32 %v917_v18, %v823_v33 }
 0x169   : > { %v919_v21 = vpop.f32.mrf.mxu0 }
 0x16a   : > { %v993_v43 = vadd.f32 %v919_v21, %v824_v39 }
 0x16b   : > { %v1086_v22 = vpop.f32.mrf.mxu0 }
 0x16c   : > { %v1161_v40 = vadd.f32 %v1086_v22, %v992_v36 }
 0x16d   : > { %v1088_v24 = vpop.f32.mrf.mxu0  ;;  %v1326_v25 = vpop.f32.mrf.mxu1 }
 0x16e   : > { %v1332_v41 = vadd.f32 %v1326_v25, %v1163_v37  ;;  %v1162_v49 = vadd.f32 %v1088_v24, %v993_v43 }
 0x16f   : > { %v1951_v27 = vpop.f32.mrf.mxu1  ;;  %v1255_v30 = vpop.f32.mrf.mxu0 }
 0x170   : > { %v1330_v44 = vadd.f32 %v1255_v30, %v1161_v40 }
 0x171   : > { %v1495_v31 = vpop.f32.mrf.mxu1  ;;  %v1257_v38 = vpop.f32.mrf.mxu0 }
 0x172   : > { %v1501_v45 = vadd.f32 %v1495_v31, %v1332_v41  ;;  %v1331_v54 = vadd.f32 %v1257_v38, %v1162_v49 }
 0x173   : > { %v1956_v34 = vpop.f32.mrf.mxu1 }
 0x176   : > { %v1424_v42 = vpop.f32.mrf.mxu0 }
 0x177   : > { %v1499_v50 = vadd.f32 %v1424_v42, %v1330_v44 }
 0x178   : > { %v1426_v46 = vpop.f32.mrf.mxu0 }
 0x179   : > { %v1664_v47 = vpop.f32.mrf.mxu1  ;;  %v1500_v58 = vadd.f32 %v1426_v46, %v1331_v54 }
 0x17a   : > { %v1670_v51 = vadd.f32 %v1664_v47, %v1501_v45 }
 0x17b   : > { %v1593_v52 = vpop.f32.mrf.mxu0  ;;  %v1961_v53 = vpop.f32.mrf.mxu1 }
 0x17c   : > { %v1668_v55 = vadd.f32 %v1593_v52, %v1499_v50  ;;  %v1679_v56 = vadd.f32 %v1675_v48, %v1670_v51 }
 0x17d   : > { %v1595_v57 = vpop.f32.mrf.mxu0 }
 0x17e   : > { %v1677_v59 = vadd.f32 %v1675_v48, %v1668_v55  ;;  %1750 = vrot.lane.b32.xlu0 %v1679_v56, %s2100_s26  ;;  %v1669_v60 = vadd.f32 %v1595_v57, %v1500_v58 }
 0x180   : > { %1683 = vrot.lane.b32.xlu1 %v1677_v59, %s2092_s30  ;;  %1681 = vst.msk [vmem:[%s2352_s27] sm:$0xff] %vm1680_vm11, %v1677_v59  ;;  %v1678_v61 = vadd.f32 %v1675_v48, %v1669_v60  ;;  %s2106_s30 = smov 118  }
 0x182   : > { %1714 = vrot.lane.b32.xlu0 %v1677_v59, %s2101_s28 }
 0x184   : > { %1688 = vrot.lane.b32.xlu1 %v1677_v59, %s2102_s29  ;;  %s2112_s29 = smov [#allocation2]  }
 0x186   : > { %1727 = vrot.lane.b32.xlu0 %v1678_v61, %s2093_s4  ;;  %s2111_s4 = smov 98  }
 0x188   : > { %1693 = vrot.lane.b32.xlu1 %v1677_v59, %s2103_s5  ;;  %s2031_s5 = sshll.u32 %s2112_s29, 4  ;;  %s2032_s5 = int_to_ptr.vmem [resolvable:$false] %s2031_s5 }
 0x189   : > { %p2034_p0 = scmp.lt.s32.totalorder %s1776_s19, %s2032_s5 }
 0x18a   : > { %1731 = vrot.lane.b32.xlu0 %v1678_v61, %s2095_s6  ;;  %s1898_s6 = sshll.u32 %s2154_s16, 8  ;;  %s2027_s16 = scalar_lea.vmem %s1776_s19, 256 }
 0x18b   : > { %p2028_p11 = scmp.ne.s32.totalorder %s1776_s19, %s2027_s16 }
 0x18c   : > { %1698 = vrot.lane.b32.xlu1 %v1677_v59, %s2104_s7  ;;  %s2033_s7 = scalar_lea.vmem %s2032_s5, 512 }
 0x18d   : > { %p2029_p12 = pnand %p2028_p11, %p2171_p5  ;;  %p2035_p1 = scmp.lt.s32.totalorder %s2033_s7, %s2027_s16 }
 0x18e   : > { %1735 = vrot.lane.b32.xlu0 %v1678_v61, %s2105_s8 }
 0x18f   : > { %p2030_p13 = pneg %p2029_p12  ;;  %p2036_p2 = por %p2035_p1, %p2034_p0 }
 0x190   : > { %1703 = vrot.lane.b32.xlu1 %v1677_v59, %s2106_s30 }
 0x191   : > { %p2037_p3 = pnand %p2036_p2, %p2030_p13 }
 0x192   : > { %1739 = vrot.lane.b32.xlu0 %v1678_v61, %s2107_s9 }
 0x194   : > { %1708 = vrot.lane.b32.xlu1 %v1677_v59, %s2108_s10 }
 0x196   : > { %1743 = vrot.lane.b32.xlu0 %v1678_v61, %s2109_s11 }
 0x198   : > { %1723 = vrot.lane.b32.xlu1 %v1678_v61, %s2110_s17 }
 0x19a   : > { %1756 = vrot.lane.b32.xlu0 %v1679_v56, %s2111_s4 }
 0x19c   : > { %1748 = vrot.lane.b32.xlu1 %v1678_v61, %s2100_s26  ;;  %s2391_s26 = scalar_lea.hbm %s2432_s3, %s1898_s6 }
 0x1a0   : > { %1716 = vrot.lane.b32.xlu1 %v1678_v61, %s2101_s28  ;;  %s1761_s28 = scalar_lea.sflag [#allocation3], %s161_s24 }
 0x1f0   : > { %v1751_v62 = vpop.permute.xlu0 %1750 }
 0x1f2   : > { %v1684_v63 = vpop.permute.xlu1 %1683 }
 0x1f3   : > { %1687 = vst.msk [vmem:[%s2352_s27] sm:$0xff] %vm1686_vm12, %v1684_v63 }
 0x1f4   : > { %v1715_v1 = vpop.permute.xlu0 %1714 }
 0x1f6   : > { %v1689_v2 = vpop.permute.xlu1 %1688 }
 0x1f7   : > { %1692 = vst.msk [vmem:[%s2352_s27] sm:$0xff] %vm1691_vm13, %v1689_v2 }
 0x1f8   : > { %v1728_v3 = vpop.permute.xlu0 %1727 }
 0x1fa   : > { %v1694_v4 = vpop.permute.xlu1 %1693 }
 0x1fb   : > { %1697 = vst.msk [vmem:[%s2352_s27] sm:$0xff] %vm1696_vm14, %v1694_v4 }
 0x1fc   : > { %v1732_v5 = vpop.permute.xlu0 %1731 }
 0x1fe   : > { %v1699_v0 = vpop.permute.xlu1 %1698 }
 0x1ff   : > { %1702 = vst.msk [vmem:[%s2352_s27] sm:$0xff] %vm1701_vm15, %v1699_v0 }
 0x200   : > { %v1736_v6 = vpop.permute.xlu0 %1735 }
 0x202   : > { %v1704_v7 = vpop.permute.xlu1 %1703 }
 0x203   : > { %1707 = vst.msk [vmem:[%s2352_s27] sm:$0xff] %vm1706_vm0, %v1704_v7 }
 0x204   : > { %v1740_v8 = vpop.permute.xlu0 %1739 }
 0x206   : > { %v1709_v9 = vpop.permute.xlu1 %1708 }
 0x207   : > { %1712 = vst.msk [vmem:[%s2352_s27] sm:$0xff] %vm1711_vm1, %v1709_v9 }
 0x208   : > { %v1744_v11 = vpop.permute.xlu0 %1743 }
 0x20a   : > { %v1724_v10 = vpop.permute.xlu1 %1723 }
 0x20b   : > { %1726 = vst.msk [vmem:[%s2352_s27 + $0x8] sm:$0xff] %vm1680_vm11, %v1724_v10 }
 0x20c   : > { %1730 = vst.msk [vmem:[%s2352_s27 + $0x8] sm:$0xff] %vm1686_vm12, %v1728_v3  ;;  %v1757_v14 = vpop.permute.xlu0 %1756 }
 0x20d   : > { %1734 = vst.msk [vmem:[%s2352_s27 + $0x8] sm:$0xff] %vm1691_vm13, %v1732_v5 }
 0x20e   : > { %1738 = vst.msk [vmem:[%s2352_s27 + $0x8] sm:$0xff] %vm1696_vm14, %v1736_v6  ;;  %v1749_v12 = vpop.permute.xlu1 %1748 }
 0x20f   : > { %1742 = vst.msk [vmem:[%s2352_s27 + $0x8] sm:$0xff] %vm1701_vm15, %v1740_v8  ;;  %v1753_v13 = vsel %vm1752_vm2, %v1749_v12, %v1751_v62 }
 0x210   : > { %1746 = vst.msk [vmem:[%s2352_s27 + $0x8] sm:$0xff] %vm1706_vm0, %v1744_v11 }
 0x211   : > { %1755 = vst.msk [vmem:[%s2352_s27 + $0x8] sm:$0xff] %vm1711_vm1, %v1753_v13 }
 0x212   : > { %v1717_v15 = vpop.permute.xlu1 %1716  ;;  %1759 = vst.msk [vmem:[%s2352_s27 + $0x8] sm:$0xff] %vm1721_vm3, %v1757_v14 }
 0x213   : > { %v1719_v16 = vsel %vm1718_vm4, %v1715_v1, %v1717_v15 }
 0x214   : > { %1722 = vst.msk [vmem:[%s2352_s27] sm:$0xff] %vm1721_vm3, %v1719_v16 }
 0x215   : > { %2040 = shalt.err (!%p2037_p3)
}
 0x216   : > { %s2041_s27 = scalar_lea.hbm %s2391_s26, 256  ;;  %s2045_s30 = scalar_lea.hbm %s2432_s3, 512 }
 0x217   : > { %p2042_p4 = scmp.ne.s32.totalorder %s2391_s26, %s2041_s27  ;;  %p2046_p9 = scmp.lt.s32.totalorder %s2391_s26, %s2432_s3 }
 0x218   : > { %p2047_p10 = scmp.lt.s32.totalorder %s2045_s30, %s2041_s27 }
 0x219   : > { %p2043_p7 = pnand %p2042_p4, %p2171_p5 }
 0x21a   : > { %p2048_p11 = por %p2047_p10, %p2046_p9 }
 0x21b   : > { %p2044_p8 = pneg %p2043_p7 }
 0x21d   : > { %p2049_p12 = pnand %p2048_p11, %p2044_p8 }
 0x21f   : > { %2052 = shalt.err (!%p2049_p12)
}
 0x220   : > { %1963 = dma.vmem_to_hbm [thread:$0]  (%p2171_p5), %s1776_s19, 256, %s2391_s26, %s1761_s28  }
 0x221 PF: > { %p1969_p13 = scmp.ge.s32.totalorder %s2087_s15, 2  ;;  %s1787_s11 = sand.u32 1, %s2075_s12  }
 0x222   : > { %s1788_s17 = scalar_lea.sflag [#allocation3], %s1787_s11 }
 0x223   : > { %p1966_p0 = pnand %p1969_p13, %p2175_p6 }
 0x225   : > { %p1967_p1 = pneg %p1966_p0 }
 0x227   : > { %2070 = dma.done.wait (%p1967_p1), %s1788_s17, 256  }
 0x228   : > { %2072 = vsyncadd (%p1967_p1), %s1788_s17, 4294967040  ;;  %p13_p2 = scmp.ge.s32.totalorder %s2158_s18, 4   ;;  %s2435_s12 = smov %s2079_s13 }
 0x229   : > { %s2436_s13 = smov %s2083_s14  ;;  %s2437_s14 = smov %s2169_s21 }
 0x22a   : > { %s2438_s15 = smov %s2158_s18  ;;  %15 = sbr.rel (!%p13_p2) target bundleno = 3 (0x3), region = 75 }
 0x22f   :  { %1793 = vsyncpa [#allocation3], 1 }
 0x230   :  { %1795 = vsyncpa [#allocation3 + $0x1], 1 }

</bundles_post_ra>
